<compile_context>
chip_gen: v7x
topology: tpu7x:2x2x1
jax: 0.10.0
libtpu: 0.0.40
codegen_flags: <defaults>
</compile_context>

<pallas_src>
import functools

import jax
import jax.numpy as jnp
from jax.experimental import pallas as pl
from jax.experimental.pallas import tpu as pltpu


def _round_up(x: int, m: int) -> int:
    return ((x + m - 1) // m) * m


def _masked_linear_kernel(x_ref, w_ref, bias_ref, o_ref, acc_ref):
    """One (i, j, k) grid step of y = x @ w_eff + bias, w_eff already (K, N)."""
    k = pl.program_id(2)

    @pl.when(k == 0)
    def _():
        acc_ref[...] = jnp.zeros_like(acc_ref)

    acc_ref[...] += jnp.dot(
        x_ref[...], w_ref[...], preferred_element_type=jnp.float32
    )  # (tm, tn) f32 accumulation on the MXU

    @pl.when(k == pl.num_programs(2) - 1)
    def _():
        o_ref[...] = (acc_ref[...] + bias_ref[...]).astype(o_ref.dtype)


@functools.partial(jax.jit, static_argnames=("tm", "tn", "tk", "compute_dtype"))
def masked_linear(x, base_weight, base_bias, sparse_weights, binary_mask,
                  *, tm=256, tn=512, tk=512, compute_dtype=jnp.float32):
    """x: (..., K); base_weight/sparse_weights/binary_mask: (N, K); base_bias: (N,)."""
    orig_shape = x.shape
    K = orig_shape[-1]
    N = base_weight.shape[0]
    x2d = x.reshape(-1, K)
    M = x2d.shape[0]
    out_dtype = x.dtype

    # --- Fuse mask into the weight ONCE, outside the grid, and lay out (K, N). ---
    w_eff = (base_weight.astype(jnp.float32)
             + sparse_weights.astype(jnp.float32) * binary_mask.astype(jnp.float32))
    w_eff = w_eff.T.astype(compute_dtype)                       # (K, N)
    x2d = x2d.astype(compute_dtype)
    bias2d = base_bias.reshape(1, N).astype(jnp.float32)        # bias add stays f32

    in_bytes = jnp.dtype(compute_dtype).itemsize
    out_bytes = jnp.dtype(out_dtype).itemsize
    sublane = 8 if in_bytes >= 4 else 16                        # f32 vs bf16 packing

    # Clamp tiles to the (aligned) problem size, then pad arrays to tile multiples.
    tm_e = min(tm, _round_up(M, sublane))
    tn_e = min(tn, _round_up(N, 128))
    tk_e = min(tk, _round_up(K, 128))
    M_p, N_p, K_p = _round_up(M, tm_e), _round_up(N, tn_e), _round_up(K, tk_e)

    if (M_p, K_p) != (M, K):
        x2d = jnp.pad(x2d, ((0, M_p - M), (0, K_p - K)))
    if (K_p, N_p) != (K, N):
        w_eff = jnp.pad(w_eff, ((0, K_p - K), (0, N_p - N)))
    if N_p != N:
        bias2d = jnp.pad(bias2d, ((0, 0), (0, N_p - N)))

    grid = (M_p // tm_e, N_p // tn_e, K_p // tk_e)

    # VMEM budget: double-buffered pipelined operands + resident f32 accumulator.
    vmem_est = int(2 * (tm_e * tk_e * in_bytes
                        + tk_e * tn_e * in_bytes
                        + tn_e * 4
                        + tm_e * tn_e * out_bytes)
                   + tm_e * tn_e * 4)
    vmem_limit = min(max(2 * vmem_est, 32 * 1024 * 1024), 64 * 1024 * 1024)

    cost = pl.CostEstimate(
        flops=2 * M_p * N_p * K_p,
        transcendentals=0,
        bytes_accessed=(M_p * K_p * in_bytes + K_p * N_p * in_bytes
                        + N_p * 4 + M_p * N_p * out_bytes),
    )

    out = pl.pallas_call(
        _masked_linear_kernel,
        out_shape=jax.ShapeDtypeStruct((M_p, N_p), out_dtype),
        grid_spec=pltpu.PrefetchScalarGridSpec(
            num_scalar_prefetch=0,
            grid=grid,
            in_specs=[
                pl.BlockSpec((tm_e, tk_e), lambda i, j, k: (i, k)),  # x
                pl.BlockSpec((tk_e, tn_e), lambda i, j, k: (k, j)),  # fused weight (K, N)
                pl.BlockSpec((1, tn_e), lambda i, j, k: (0, j)),     # bias
            ],
            out_specs=pl.BlockSpec((tm_e, tn_e), lambda i, j, k: (i, j)),
            scratch_shapes=[pltpu.VMEM((tm_e, tn_e), jnp.float32)],
        ),
        compiler_params=pltpu.CompilerParams(
            dimension_semantics=("parallel", "parallel", "arbitrary"),
            vmem_limit_bytes=vmem_limit,
        ),
        cost_estimate=cost,
    )(x2d, w_eff, bias2d)

    out = out[:M, :N]
    return out.reshape(*orig_shape[:-1], N)


def init_block_sparse_mask(key, weight_shape, keep_ratio, block_size):
    """Deterministic stand-in for init_sparse_weights(sps_type='block_sparse')."""
    N, K = weight_shape
    nb_r, nb_c = N // block_size, K // block_size
    n_blocks = nb_r * nb_c
    n_keep = max(1, int(round(keep_ratio * n_blocks)))
    perm = jax.random.permutation(key, n_blocks)
    block_mask_flat = jnp.zeros((n_blocks,), jnp.float32).at[perm[:n_keep]].set(1.0)
    block_mask = block_mask_flat.reshape(nb_r, nb_c)
    mask = jnp.repeat(jnp.repeat(block_mask, block_size, axis=0), block_size, axis=1)
    return mask


if __name__ == "__main__":
    # Small, module-consistent shapes: batch=2, seq=8, in_features=128, out_features=128.
    batch, seq, in_features, out_features = 2, 8, 128, 128
    block_size = 16
    keep_ratio = 0.5

    key = jax.random.PRNGKey(0)
    k_x, k_w, k_b, k_s, k_m = jax.random.split(key, 5)

    x = jax.random.normal(k_x, (batch, seq, in_features), dtype=jnp.float32)
    base_weight = jax.random.normal(k_w, (out_features, in_features), jnp.float32) * 0.05
    base_bias = jax.random.normal(k_b, (out_features,), jnp.float32) * 0.1
    # nn.Parameter(torch.zeros_like(...)) in __init__; small random values here so
    # the masked-sparse branch is actually exercised (deterministic init).
    sparse_weights = jax.random.normal(k_s, (out_features, in_features), jnp.float32) * 0.01
    binary_mask = init_block_sparse_mask(
        k_m, (out_features, in_features), keep_ratio, block_size
    )
    # TODO(synk): sparse_bias path omitted (use_sparse_bias defaults to False -> bias is None).

    ref = (x @ base_weight.T + base_bias) + (x @ (sparse_weights * binary_mask).T)

    # 1) f32 compute path (default): tight tolerance.
    out_f32 = masked_linear(x, base_weight, base_bias, sparse_weights, binary_mask)
    out_f32 = jax.block_until_ready(out_f32)
    assert out_f32.shape == (batch, seq, out_features)
    assert jnp.allclose(out_f32, ref, atol=1e-4, rtol=1e-4), "f32 mismatch vs reference"

    # 2) bf16 compute path (v6e/v7x recommendation): f32 accumulation, looser tolerance.
    out_bf16 = masked_linear(x, base_weight, base_bias, sparse_weights, binary_mask,
                             compute_dtype=jnp.bfloat16)
    out_bf16 = jax.block_until_ready(out_bf16)
    assert jnp.allclose(out_bf16, ref, atol=5e-2, rtol=5e-2), "bf16 mismatch vs reference"

    # 3) Ragged batch*seq (exercises M padding path; no divisibility assert anymore).
    x_rag = jax.random.normal(k_x, (3, 5, in_features), dtype=jnp.float32)
    ref_rag = (x_rag @ base_weight.T + base_bias) + (x_rag @ (sparse_weights * binary_mask).T)
    out_rag = jax.block_until_ready(
        masked_linear(x_rag, base_weight, base_bias, sparse_weights, binary_mask)
    )
    assert out_rag.shape == (3, 5, out_features)
    assert jnp.allclose(out_rag, ref_rag, atol=1e-4, rtol=1e-4), "ragged mismatch vs reference"

    print("KERNEL_OK")
</pallas_src>

<mosaic_0001>
module attributes {stable_mosaic.version = 11 : i64} {
  func.func @_masked_linear_kernel(%arg0: i32, %arg1: i32, %arg2: i32, %arg3: memref<16x128xf32, #tpu.memory_space<vmem>>, %arg4: memref<128x128xf32, #tpu.memory_space<vmem>>, %arg5: memref<1x128xf32, #tpu.memory_space<vmem>>, %arg6: memref<16x128xf32, #tpu.memory_space<vmem>>, %arg7: memref<16x128xf32, #tpu.memory_space<vmem>>) attributes {dimension_semantics = [#tpu.dimension_semantics<parallel>, #tpu.dimension_semantics<parallel>, #tpu.dimension_semantics<arbitrary>], iteration_bounds = array<i64: 1, 1, 1>, scalar_prefetch = 0 : i64, scratch_operands = 1 : i64, tpu.core_type = #tpu.core_type<tc>, window_params = [{transform_indices = @transform_0, window_bounds = array<i64: 16, 128>}, {transform_indices = @transform_1, window_bounds = array<i64: 128, 128>}, {transform_indices = @transform_2, window_bounds = array<i64: 1, 128>}, {transform_indices = @transform_3, window_bounds = array<i64: 16, 128>}]} {
    %c0_i32 = arith.constant 0 : i32
    %0 = arith.cmpi eq, %arg2, %c0_i32 : i32
    %1 = arith.extui %0 : i1 to i32
    %c0_i32_0 = arith.constant 0 : i32
    %2 = arith.cmpi ne, %1, %c0_i32_0 : i32
    scf.if %2 {
      %cst_10 = arith.constant 0.000000e+00 : f32
      %12 = vector.broadcast %cst_10 : f32 to vector<16x128xf32>
      %c0_11 = arith.constant 0 : index
      %c0_12 = arith.constant 0 : index
      %13 = vector.load %arg7[%c0_11, %c0_12] : memref<16x128xf32, #tpu.memory_space<vmem>>, vector<16x128xf32>
      tpu.vector_store %arg7[%c0_11, %c0_12], %12 {strides = array<i32>} : memref<16x128xf32, #tpu.memory_space<vmem>>, vector<16x128xf32>,
    } else {
    }
    %c0 = arith.constant 0 : index
    %c0_1 = arith.constant 0 : index
    %3 = vector.load %arg7[%c0, %c0_1] : memref<16x128xf32, #tpu.memory_space<vmem>>, vector<16x128xf32>
    %c0_2 = arith.constant 0 : index
    %c0_3 = arith.constant 0 : index
    %4 = vector.load %arg3[%c0_2, %c0_3] : memref<16x128xf32, #tpu.memory_space<vmem>>, vector<16x128xf32>
    %c0_4 = arith.constant 0 : index
    %c0_5 = arith.constant 0 : index
    %5 = vector.load %arg4[%c0_4, %c0_5] : memref<128x128xf32, #tpu.memory_space<vmem>>, vector<128x128xf32>
    %cst = arith.constant dense<0.000000e+00> : vector<16x128xf32>
    %6 = tpu.matmul %4, %5, %cst {dimension_numbers = #tpu.dot_dimension_numbers<[1], [0], [0], [1], [0, 0, 1, 1], [], []>} : vector<16x128xf32>, vector<128x128xf32>, vector<16x128xf32> -> vector<16x128xf32>
    %7 = arith.addf %3, %6 : vector<16x128xf32>
    %c0_6 = arith.constant 0 : index
    %c0_7 = arith.constant 0 : index
    %8 = vector.load %arg7[%c0_6, %c0_7] : memref<16x128xf32, #tpu.memory_space<vmem>>, vector<16x128xf32>
    tpu.vector_store %arg7[%c0_6, %c0_7], %7 {strides = array<i32>} : memref<16x128xf32, #tpu.memory_space<vmem>>, vector<16x128xf32>,
    %c0_i32_8 = arith.constant 0 : i32
    %9 = arith.cmpi eq, %arg2, %c0_i32_8 : i32
    %10 = arith.extui %9 : i1 to i32
    %c0_i32_9 = arith.constant 0 : i32
    %11 = arith.cmpi ne, %10, %c0_i32_9 : i32
    scf.if %11 {
      %c0_10 = arith.constant 0 : index
      %c0_11 = arith.constant 0 : index
      %12 = vector.load %arg7[%c0_10, %c0_11] : memref<16x128xf32, #tpu.memory_space<vmem>>, vector<16x128xf32>
      %c0_12 = arith.constant 0 : index
      %c0_13 = arith.constant 0 : index
      %13 = vector.load %arg5[%c0_12, %c0_13] : memref<1x128xf32, #tpu.memory_space<vmem>>, vector<1x128xf32>
      %14 = vector.broadcast %13 : vector<1x128xf32> to vector<16x128xf32>
      %15 = arith.addf %12, %14 : vector<16x128xf32>
      %c0_14 = arith.constant 0 : index
      %c0_15 = arith.constant 0 : index
      %16 = vector.load %arg6[%c0_14, %c0_15] : memref<16x128xf32, #tpu.memory_space<vmem>>, vector<16x128xf32>
      tpu.vector_store %arg6[%c0_14, %c0_15], %15 {strides = array<i32>} : memref<16x128xf32, #tpu.memory_space<vmem>>, vector<16x128xf32>,
    } else {
    }
    return
  }
  func.func @transform_0(%arg0: i32, %arg1: i32, %arg2: i32) -> (i32, i32) {
    %c0_i32 = arith.constant 0 : i32
    return %arg0, %arg2 : i32, i32
  }
  func.func @transform_1(%arg0: i32, %arg1: i32, %arg2: i32) -> (i32, i32) {
    %c0_i32 = arith.constant 0 : i32
    return %arg2, %arg1 : i32, i32
  }
  func.func @transform_2(%arg0: i32, %arg1: i32, %arg2: i32) -> (i32, i32) {
    %c0_i32 = arith.constant 0 : i32
    %c0_i32_0 = arith.constant 0 : i32
    return %c0_i32, %arg1 : i32, i32
  }
  func.func @transform_3(%arg0: i32, %arg1: i32, %arg2: i32) -> (i32, i32) {
    %c0_i32 = arith.constant 0 : i32
    return %arg0, %arg1 : i32, i32
  }
}

</mosaic_0001>

<bundles_post_ra>
// kernel: masked_linear.1
= control target key start
LH: loop header
LB: loop body
LE: loop exit
PB: predicated region body
PF: predicated region fallthrough
CT: control target
= control target key end

     0   :  { %s357_s0 = inlined_call_operand.vmem [shape: f32[16,128], index: 0, kind: input, shape index: {}]   ;;  %s358_s1 = inlined_call_operand.vmem [shape: f32[128,128], index: 1, kind: input, shape index: {}]   ;;  %s359_s2 = inlined_call_operand.vmem [shape: f32[1,128], index: 2, kind: input, shape index: {}]   ;;  %s360_s3 = inlined_call_operand.hbm [shape: f32[16,128], index: 3, kind: output, shape index: {}]  }
   0x1   :  { %v25_v0 = vld [vmem:[%s358_s1] sm:$0xff]  ;;  %v26_v1 = vld [vmem:[%s358_s1 + $0x8] sm:$0xff]  ;;  %v27_v2 = vld [vmem:[%s358_s1 + $0x10] sm:$0xff] }
   0x2   :  { %v206_v3 = vpack.c.bf16 %v26_v1, %v25_v0  ;;  %v28_v4 = vld [vmem:[%s358_s1 + $0x18] sm:$0xff]  ;;  %v29_v6 = vld [vmem:[%s358_s1 + $0x20] sm:$0xff]  ;;  %v30_v7 = vld [vmem:[%s358_s1 + $0x28] sm:$0xff] }
   0x3   :  { %v210_v5 = vpack.c.bf16 %v28_v4, %v27_v2  ;;  %v214_v8 = vpack.c.bf16 %v30_v7, %v29_v6  ;;  %v23_v9 = vld [vmem:[%s357_s0] sm:$0xff]  ;;  %v31_v10 = vld [vmem:[%s358_s1 + $0x30] sm:$0xff]  ;;  %v32_v11 = vld [vmem:[%s358_s1 + $0x38] sm:$0xff] }
   0x4   :  { %207 = vmatprep.subr.bf16.mxu0 %v206_v3  ;;  %203 = vmatprep.mubr.f32.mxu0 %v23_v9 }
   0x5   :  { %209 = vmatpush3.bf16.msra.mxu0 %v206_v3 }
   0x6   :  { %211 = vmatprep.subr.bf16.mxu0 %v210_v5 }
   0x7   :  { %8 = vsyncpa [#allocation4], 0  ;;  %v218_v12 = vpack.c.bf16 %v32_v11, %v31_v10  ;;  %v33_v13 = vld [vmem:[%s358_s1 + $0x40] sm:$0xff]  ;;  %v34_v14 = vld [vmem:[%s358_s1 + $0x48] sm:$0xff]  ;;  %s265_s23 = smov [#allocation3]  }
   0x8   :  { %v222_v15 = vpack.c.bf16 %v34_v14, %v33_v13  ;;  %v35_v16 = vld [vmem:[%s358_s1 + $0x50] sm:$0xff]  ;;  %v36_v17 = vld [vmem:[%s358_s1 + $0x58] sm:$0xff]  ;;  %v37_v19 = vld [vmem:[%s358_s1 + $0x60] sm:$0xff]  ;;  %s141_s24 = sshll.u32 %s265_s23, 4  ;;  %s142_s24 = int_to_ptr.vmem [resolvable:$true] %s141_s24 }
   0x9   :  { %213 = vmatpush3.bf16.msra.mxu0 %v210_v5  ;;  %v226_v18 = vpack.c.bf16 %v36_v17, %v35_v16  ;;  %v38_v20 = vld [vmem:[%s358_s1 + $0x68] sm:$0xff]  ;;  %v39_v22 = vld [vmem:[%s358_s1 + $0x70] sm:$0xff]  ;;  %v40_v23 = vld [vmem:[%s358_s1 + $0x78] sm:$0xff]  ;;  %s241_s1 = scalar_lea.vmem %s142_s24, 256  ;;  %p246_p1 = scmp.lt.s32.totalorder %s142_s24, %s142_s24 }
   0xa   :  { %215 = vmatprep.subr.bf16.mxu0 %v214_v8  ;;  %v230_v21 = vpack.c.bf16 %v38_v20, %v37_v19  ;;  %v234_v24 = vpack.c.bf16 %v40_v23, %v39_v22  ;;  %v24_v25 = vld [vmem:[%s357_s0 + $0x8] sm:$0xff]  ;;  %v152_v26 = vld [vmem:[%s359_s2] ss:$0 sm:$0xff]  ;;  %p242_p0 = scmp.ne.s32.totalorder %s142_s24, %s241_s1  ;;  %p247_p2 = scmp.lt.s32.totalorder %s241_s1, %s241_s1 }
   0xc   :  { %p248_p3 = por %p247_p2, %p246_p1 }
   0xd   :  { %217 = vmatpush3.bf16.msra.mxu0 %v214_v8 }
   0xe   :  { %219 = vmatprep.subr.bf16.mxu0 %v218_v12  ;;  %p249_p4 = pnand %p248_p3, %p242_p0 }
  0x11   :  { %221 = vmatpush3.bf16.msra.mxu0 %v218_v12 }
  0x12   :  { %223 = vmatprep.subr.bf16.mxu0 %v222_v15 }
  0x15   :  { %225 = vmatpush3.bf16.msra.mxu0 %v222_v15 }
  0x16   :  { %227 = vmatprep.subr.bf16.mxu0 %v226_v18 }
  0x19   :  { %229 = vmatpush3.bf16.msra.mxu0 %v226_v18 }
  0x1a   :  { %231 = vmatprep.subr.bf16.mxu0 %v230_v21 }
  0x1d   :  { %233 = vmatpush3.bf16.msra.mxu0 %v230_v21 }
  0x1e   :  { %235 = vmatprep.subr.bf16.mxu0 %v234_v24 }
  0x21   :  { %237 = vmatpush3.bf16.msra.mxu0 %v234_v24 }
  0x24   :  { %204 = vmatmul.mubr.f32.vlgmr.msra.gmra.mrb[0].mxu0 %v24_v25 }
  0xf7   :  { %v205_v27 = vpop.f32.mrb[0].mxu0 }
  0xf8   :  { %v133_v28 = vadd.f32 %v205_v27, %v152_v26  ;;  %v107_v29 = vpop.f32.mrb[1].mxu0 }
  0xf9   :  { %v132_v30 = vadd.f32 %v152_v26, %v107_v29 }
  0xfa   :  { %135 = vst [vmem:[#allocation3 + $0x8] sm:$0xff] %v133_v28 }
  0xfb   :  { %134 = vst [vmem:[#allocation3] sm:$0xff] %v132_v30 }
  0xfc   :  { %252 = shalt.err (!%p249_p4)
}
  0xfd   :  { %s253_s2 = scalar_lea.hbm %s360_s3, 256 }
  0xfe   :  { %p254_p5 = scmp.ne.s32.totalorder %s360_s3, %s253_s2  ;;  %p257_p6 = scmp.lt.u32.totalorder %s253_s2, %s360_s3 }
 0x100   :  { %p259_p7 = pnand %p257_p6, %p254_p5 }
 0x102   :  { %262 = shalt.err (!%p259_p7)
}
 0x103   :  { %s266_s30 = smov 128   ;;  %s267_s4 = smov 8  }
 0x104   :  { %147 = dma.vmem_to_hbm [thread:$0]  %s142_s24, 256, %s360_s3, [#allocation4], %s266_s30, %s266_s30, %s267_s4  }
 0x105   :  { %263 = dma.done.wait [#allocation4], 256  }
 0x106   :  { %264 = vsyncadd [#allocation4], 4294967040 }
 0x107   :  { %151 = vsyncpa [#allocation4], 1 }

</bundles_post_ra>
